<compile_context>
chip_gen: v7x
topology: tpu7x:2x2x1
jax: 0.10.0
libtpu: 0.0.40
codegen_flags: <defaults>
</compile_context>

<pallas_src>
import functools
import math

import jax
import jax.numpy as jnp
from jax.experimental import pallas as pl
from jax.experimental.pallas import tpu as pltpu

SUBLANE = 8


def _round_up(x, m):
    return (x + m - 1) // m * m


# ---------------------------------------------------------------------------
# Fused kernel: whole MLP on one (tm, K) batch tile; weights resident in VMEM.
# ---------------------------------------------------------------------------
def _mlp_fused_kernel(*refs, n_layers):
    """refs = (x, w0, b0, w1, b1, ..., out).  o = sigmoid(W_L @ relu(... W_1 @ x + b_1 ...) + b_L)."""
    x_ref, o_ref = refs[0], refs[-1]
    wb = refs[1:-1]
    h = x_ref[...].astype(jnp.float32)
    for l in range(n_layers):                       # static Python loop (L known at trace time)
        w = wb[2 * l][...]                          # (d_in, d_out), bf16 (MXU operand)
        b = wb[2 * l + 1][...]                      # (1, d_out), f32
        y = jnp.dot(h.astype(w.dtype), w, preferred_element_type=jnp.float32) + b
        if l < n_layers - 1:
            h = jnp.maximum(y, 0.0)                 # ReLU on the VPU, f32
        else:
            h = jax.nn.sigmoid(y)                   # sigmoid: exp on the EUP, f32
    o_ref[...] = h.astype(o_ref.dtype)


# ---------------------------------------------------------------------------
# Parameter init (mirrors the PyTorch module) + one-time packing.
# ---------------------------------------------------------------------------
def init_mlp_params(key, layers):
    """Hidden layers: kaiming_uniform_(relu); last layer: xavier_uniform_.
    Biases: PyTorch Linear default uniform(-1/sqrt(fan_in), 1/sqrt(fan_in))."""
    params = []
    n_layers = len(layers) - 1
    for i in range(1, len(layers)):
        fan_in, fan_out = layers[i - 1], layers[i]
        key, kw, kb = jax.random.split(key, 3)
        if i < n_layers:                            # hidden -> kaiming uniform (gain=sqrt(2))
            bound = math.sqrt(6.0 / fan_in)
        else:                                       # last -> xavier uniform
            bound = math.sqrt(6.0 / (fan_in + fan_out))
        w = jax.random.uniform(kw, (fan_out, fan_in), jnp.float32, -bound, bound)
        b_bound = 1.0 / math.sqrt(fan_in)
        b = jax.random.uniform(kb, (fan_out,), jnp.float32, -b_bound, b_bound)
        params.append((w, b))
    return params


def pack_params(params, w_dtype=jnp.bfloat16):
    """Hoist the (out,in)->(in,out) transpose and dtype cast out of the forward path.
    Weights -> bf16 matmul operands (f32 accumulation in-kernel); biases stay f32."""
    packed = []
    for w, b in params:
        packed.append((jnp.asarray(w.T, w_dtype),
                       jnp.asarray(b, jnp.float32).reshape(1, -1)))
    return tuple(packed)


# ---------------------------------------------------------------------------
# Forward wrapper: single fused pallas_call, no HBM pad/slice passes.
# ---------------------------------------------------------------------------
def _pick_tm(m):
    """>=2 grid steps for any m>=16 (keeps both v7x TCs busy), capped at 1024 rows to
    amortize per-grid-step overhead; single 8-row tile for tiny batches."""
    if m <= SUBLANE:
        return SUBLANE
    return min(1024, _round_up(pl.cdiv(m, 2), SUBLANE))


@jax.jit
def mlp_forward(x, packed):
    m, k = x.shape
    n_layers = len(packed)
    n_out = packed[-1][0].shape[1]
    tm = _pick_tm(m)
    grid = (pl.cdiv(m, tm),)                         # partial last tile handled by Pallas

    in_specs = [pl.BlockSpec((tm, k), lambda i: (i, 0))]          # activation tile, true width
    flat = []
    for w, b in packed:
        in_specs.append(pl.BlockSpec(w.shape, lambda i: (0, 0)))  # whole weight, constant block
        in_specs.append(pl.BlockSpec(b.shape, lambda i: (0, 0)))  # whole bias, constant block
        flat += [w, b]

    w_bytes = sum(w.size * w.dtype.itemsize + b.size * b.dtype.itemsize for w, b in packed)
    cost = pl.CostEstimate(
        flops=2 * m * sum(w.shape[0] * w.shape[1] for w, _ in packed),
        transcendentals=m * n_out,                                 # final sigmoid exp
        bytes_accessed=x.size * x.dtype.itemsize + m * n_out * 4 + w_bytes,
    )

    return pl.pallas_call(
        functools.partial(_mlp_fused_kernel, n_layers=n_layers),
        out_shape=jax.ShapeDtypeStruct((m, n_out), x.dtype),       # true output width
        grid=grid,
        in_specs=in_specs,
        out_specs=pl.BlockSpec((tm, n_out), lambda i: (i, 0)),
        compiler_params=pltpu.CompilerParams(dimension_semantics=("parallel",)),
        cost_estimate=cost,
    )(x, *flat)


# ---------------------------------------------------------------------------
# Pure-JAX reference (PyTorch semantics, f32 params) for correctness checking.
# ---------------------------------------------------------------------------
def mlp_reference(x, params):
    n = len(params)
    for i, (w, b) in enumerate(params):
        y = x @ w.T + b
        x = jnp.maximum(y, 0.0) if i < n - 1 else jax.nn.sigmoid(y)
    return x


if __name__ == "__main__":
    key = jax.random.PRNGKey(0)
    layers = [16, 32, 32, 1]              # n_inputs=16, two hidden layers, 1 output
    kp, kx, kx2 = jax.random.split(key, 3)

    params = init_mlp_params(kp, layers)
    packed = pack_params(params)          # one-time transpose + bf16 cast (hoisted)

    # Small batch: single 8-row tile.
    x = jax.random.normal(kx, (8, layers[0]), jnp.float32)
    out = jax.block_until_ready(mlp_forward(x, packed))
    ref = mlp_reference(x, params)
    assert out.shape == (8, layers[-1])
    # bf16 matmul operands (f32 accumulation) -> relaxed tolerance vs f32 reference.
    assert jnp.allclose(out, ref, atol=2e-2, rtol=2e-2)

    # Larger, non-tile-multiple batch: exercises the 2-step "parallel" grid (both v7x TCs)
    # and the masked partial last tile (tm=304, tiles of 304 + 296 valid rows).
    x2 = jax.random.normal(kx2, (600, layers[0]), jnp.float32)
    out2 = jax.block_until_ready(mlp_forward(x2, packed))
    ref2 = mlp_reference(x2, params)
    assert out2.shape == (600, layers[-1])
    assert jnp.allclose(out2, ref2, atol=2e-2, rtol=2e-2)

    print("KERNEL_OK")
</pallas_src>

<mosaic_0001>
module attributes {stable_mosaic.version = 11 : i64} {
  func.func @_mlp_fused_kernel(%arg0: i32, %arg1: memref<8x16xf32, #tpu.memory_space<vmem>>, %arg2: memref<16x32xbf16, #tpu.memory_space<vmem>>, %arg3: memref<1x32xf32, #tpu.memory_space<vmem>>, %arg4: memref<32x32xbf16, #tpu.memory_space<vmem>>, %arg5: memref<1x32xf32, #tpu.memory_space<vmem>>, %arg6: memref<32x1xbf16, #tpu.memory_space<vmem>>, %arg7: memref<1x1xf32, #tpu.memory_space<vmem>>, %arg8: memref<8x1xf32, #tpu.memory_space<vmem>>) attributes {dimension_semantics = [#tpu.dimension_semantics<parallel>], iteration_bounds = array<i64: 1>, scalar_prefetch = 0 : i64, scratch_operands = 0 : i64, tpu.core_type = #tpu.core_type<tc>, window_params = [{transform_indices = @transform_0, window_bounds = array<i64: 8, 16>}, {pipeline_mode = #tpu.pipeline_mode<synchronous>, transform_indices = @transform_1, window_bounds = array<i64: 16, 32>}, {pipeline_mode = #tpu.pipeline_mode<synchronous>, transform_indices = @transform_2, window_bounds = array<i64: 1, 32>}, {pipeline_mode = #tpu.pipeline_mode<synchronous>, transform_indices = @transform_3, window_bounds = array<i64: 32, 32>}, {pipeline_mode = #tpu.pipeline_mode<synchronous>, transform_indices = @transform_4, window_bounds = array<i64: 1, 32>}, {pipeline_mode = #tpu.pipeline_mode<synchronous>, transform_indices = @transform_5, window_bounds = array<i64: 32, 1>}, {pipeline_mode = #tpu.pipeline_mode<synchronous>, transform_indices = @transform_6, window_bounds = array<i64: 1, 1>}, {transform_indices = @transform_7, window_bounds = array<i64: 8, 1>}]} {
    %c0 = arith.constant 0 : index
    %c0_0 = arith.constant 0 : index
    %0 = vector.load %arg1[%c0, %c0_0] : memref<8x16xf32, #tpu.memory_space<vmem>>, vector<8x16xf32>
    %c0_1 = arith.constant 0 : index
    %c0_2 = arith.constant 0 : index
    %1 = vector.load %arg2[%c0_1, %c0_2] : memref<16x32xbf16, #tpu.memory_space<vmem>>, vector<16x32xbf16>
    %c0_3 = arith.constant 0 : index
    %c0_4 = arith.constant 0 : index
    %2 = vector.load %arg3[%c0_3, %c0_4] : memref<1x32xf32, #tpu.memory_space<vmem>>, vector<1x32xf32>
    %3 = arith.truncf %0 : vector<8x16xf32> to vector<8x16xbf16>
    %cst = arith.constant dense<0.000000e+00> : vector<8x32xf32>
    %4 = tpu.matmul %3, %1, %cst {dimension_numbers = #tpu.dot_dimension_numbers<[1], [0], [0], [1], [0, 0, 1, 1], [], []>} : vector<8x16xbf16>, vector<16x32xbf16>, vector<8x32xf32> -> vector<8x32xf32>
    %5 = vector.broadcast %2 : vector<1x32xf32> to vector<8x32xf32>
    %6 = arith.addf %4, %5 : vector<8x32xf32>
    %cst_5 = arith.constant 0.000000e+00 : f32
    %7 = vector.broadcast %cst_5 : f32 to vector<8x32xf32>
    %8 = arith.maximumf %6, %7 : vector<8x32xf32>
    %c0_6 = arith.constant 0 : index
    %c0_7 = arith.constant 0 : index
    %9 = vector.load %arg4[%c0_6, %c0_7] : memref<32x32xbf16, #tpu.memory_space<vmem>>, vector<32x32xbf16>
    %c0_8 = arith.constant 0 : index
    %c0_9 = arith.constant 0 : index
    %10 = vector.load %arg5[%c0_8, %c0_9] : memref<1x32xf32, #tpu.memory_space<vmem>>, vector<1x32xf32>
    %11 = arith.truncf %8 : vector<8x32xf32> to vector<8x32xbf16>
    %cst_10 = arith.constant dense<0.000000e+00> : vector<8x32xf32>
    %12 = tpu.matmul %11, %9, %cst_10 {dimension_numbers = #tpu.dot_dimension_numbers<[1], [0], [0], [1], [0, 0, 1, 1], [], []>} : vector<8x32xbf16>, vector<32x32xbf16>, vector<8x32xf32> -> vector<8x32xf32>
    %13 = vector.broadcast %10 : vector<1x32xf32> to vector<8x32xf32>
    %14 = arith.addf %12, %13 : vector<8x32xf32>
    %cst_11 = arith.constant 0.000000e+00 : f32
    %15 = vector.broadcast %cst_11 : f32 to vector<8x32xf32>
    %16 = arith.maximumf %14, %15 : vector<8x32xf32>
    %c0_12 = arith.constant 0 : index
    %c0_13 = arith.constant 0 : index
    %17 = vector.load %arg6[%c0_12, %c0_13] : memref<32x1xbf16, #tpu.memory_space<vmem>>, vector<32x1xbf16>
    %c0_14 = arith.constant 0 : index
    %c0_15 = arith.constant 0 : index
    %18 = vector.load %arg7[%c0_14, %c0_15] : memref<1x1xf32, #tpu.memory_space<vmem>>, vector<1x1xf32>
    %19 = arith.truncf %16 : vector<8x32xf32> to vector<8x32xbf16>
    %cst_16 = arith.constant dense<0.000000e+00> : vector<8x1xf32>
    %20 = tpu.matmul %19, %17, %cst_16 {dimension_numbers = #tpu.dot_dimension_numbers<[1], [0], [0], [1], [0, 0, 1, 1], [], []>} : vector<8x32xbf16>, vector<32x1xbf16>, vector<8x1xf32> -> vector<8x1xf32>
    %21 = vector.broadcast %18 : vector<1x1xf32> to vector<8x1xf32>
    %22 = arith.addf %20, %21 : vector<8x1xf32>
    %23 = arith.negf %22 : vector<8x1xf32>
    %24 = math.exp %23 : vector<8x1xf32>
    %cst_17 = arith.constant 1.000000e+00 : f32
    %25 = vector.broadcast %cst_17 : f32 to vector<8x1xf32>
    %26 = arith.addf %25, %24 : vector<8x1xf32>
    %27 = arith.divf %25, %26 : vector<8x1xf32>
    %c0_18 = arith.constant 0 : index
    %c0_19 = arith.constant 0 : index
    %28 = vector.load %arg8[%c0_18, %c0_19] : memref<8x1xf32, #tpu.memory_space<vmem>>, vector<8x1xf32>
    tpu.vector_store %arg8[%c0_18, %c0_19], %27 {strides = array<i32>} : memref<8x1xf32, #tpu.memory_space<vmem>>, vector<8x1xf32>,
    return
  }
  func.func @transform_0(%arg0: i32) -> (i32, i32) {
    %c0_i32 = arith.constant 0 : i32
    %c0_i32_0 = arith.constant 0 : i32
    return %arg0, %c0_i32 : i32, i32
  }
  func.func @transform_1(%arg0: i32) -> (i32, i32) {
    %c0_i32 = arith.constant 0 : i32
    %c0_i32_0 = arith.constant 0 : i32
    %c0_i32_1 = arith.constant 0 : i32
    return %c0_i32, %c0_i32_0 : i32, i32
  }
  func.func @transform_2(%arg0: i32) -> (i32, i32) {
    %c0_i32 = arith.constant 0 : i32
    %c0_i32_0 = arith.constant 0 : i32
    %c0_i32_1 = arith.constant 0 : i32
    return %c0_i32, %c0_i32_0 : i32, i32
  }
  func.func @transform_3(%arg0: i32) -> (i32, i32) {
    %c0_i32 = arith.constant 0 : i32
    %c0_i32_0 = arith.constant 0 : i32
    %c0_i32_1 = arith.constant 0 : i32
    return %c0_i32, %c0_i32_0 : i32, i32
  }
  func.func @transform_4(%arg0: i32) -> (i32, i32) {
    %c0_i32 = arith.constant 0 : i32
    %c0_i32_0 = arith.constant 0 : i32
    %c0_i32_1 = arith.constant 0 : i32
    return %c0_i32, %c0_i32_0 : i32, i32
  }
  func.func @transform_5(%arg0: i32) -> (i32, i32) {
    %c0_i32 = arith.constant 0 : i32
    %c0_i32_0 = arith.constant 0 : i32
    %c0_i32_1 = arith.constant 0 : i32
    return %c0_i32, %c0_i32_0 : i32, i32
  }
  func.func @transform_6(%arg0: i32) -> (i32, i32) {
    %c0_i32 = arith.constant 0 : i32
    %c0_i32_0 = arith.constant 0 : i32
    %c0_i32_1 = arith.constant 0 : i32
    return %c0_i32, %c0_i32_0 : i32, i32
  }
  func.func @transform_7(%arg0: i32) -> (i32, i32) {
    %c0_i32 = arith.constant 0 : i32
    %c0_i32_0 = arith.constant 0 : i32
    return %arg0, %c0_i32 : i32, i32
  }
}

</mosaic_0001>

<bundles_post_ra>
// kernel: mlp_forward.1
= control target key start
LH: loop header
LB: loop body
LE: loop exit
PB: predicated region body
PF: predicated region fallthrough
CT: control target
= control target key end

     0   :  { %s412_s0 = inlined_call_operand.vmem [shape: f32[8,16], index: 0, kind: input, shape index: {}]   ;;  %s413_s1 = inlined_call_operand.vmem [shape: bf16[16,32], index: 1, kind: input, shape index: {}]   ;;  %s414_s2 = inlined_call_operand.hbm [shape: f32[1,32], index: 2, kind: input, shape index: {}]   ;;  %s415_s3 = inlined_call_operand.vmem [shape: bf16[32,32], index: 3, kind: input, shape index: {}]   ;;  %s416_s4 = inlined_call_operand.vmem [shape: f32[1,32], index: 4, kind: input, shape index: {}]   ;;  %s417_s5 = inlined_call_operand.vmem [shape: bf16[32,1], index: 5, kind: input, shape index: {}]   ;;  %s418_s6 = inlined_call_operand.<no memory space> [shape: f32[1,1], index: 6, kind: input, shape index: {}]   ;;  %s419_s7 = inlined_call_operand.vmem [shape: f32[8,1], index: 7, kind: output, shape index: {}]  }
   0x1   :  { %v12_v0 = vstv %s418_s6 }
   0x2   :  { %13 = vst [vmem:[#allocation2] sm:$0x1] %v12_v0 }
   0x3   :  { %14 = vsyncpa [#allocation4], 0  ;;  %s330_s26 = smov [#allocation3]   ;;  %s306_s30 = scalar_lea.hbm %s414_s2, 16 }
   0x4   :  { %s25_s27 = sshll.u32 %s330_s26, 4  ;;  %p307_p0 = scmp.ne.s32.totalorder %s414_s2, %s306_s30  ;;  %s26_s27 = int_to_ptr.vmem [resolvable:$true] %s25_s27 }
   0x5   :  { %p310_p1 = scmp.lt.u32.totalorder %s306_s30, %s414_s2 }
   0x7   :  { %p312_p2 = pnand %p310_p1, %p307_p0 }
   0x9   :  { %315 = shalt.err (!%p312_p2)
}
   0xa   :  { %s316_s6 = scalar_lea.vmem %s26_s27, 16  ;;  %s320_s12 = scalar_lea.vmem %s26_s27, 32 }
   0xb   :  { %p317_p3 = scmp.ne.s32.totalorder %s26_s27, %s316_s6  ;;  %p321_p4 = scmp.lt.s32.totalorder %s26_s27, %s26_s27 }
   0xc   :  { %p322_p5 = scmp.lt.s32.totalorder %s320_s12, %s316_s6 }
   0xe   :  { %p323_p6 = por %p322_p5, %p321_p4 }
  0x10   :  { %p324_p7 = pnand %p323_p6, %p317_p3 }
  0x12   :  { %327 = shalt.err (!%p324_p7)
}
  0x13   :  { %28 = dma.hbm_to_vmem [thread:$0]  %s414_s2, 16, %s26_s27, [#allocation4]  }
  0x14   :  { %328 = dma.done.wait [#allocation4], 16  }
  0x15   :  { %329 = vsyncadd [#allocation4], 4294967280  ;;  %v331_v1 = vmov 0.0   ;;  %vm332_vm0 = vmmov 0   ;;  %v297_v2 = vld [vmem:[%s413_s1] sm:$0xff]   ;;  %vm58_vm1 = vcmask 130048  }
  0x16   :  { %272 = vmatprep.subr.bf16.mxu0 %v331_v1  ;;  %274 = vmatprep.mubr.msk.bf16.mxu0 %vm332_vm0, %v331_v1  ;;  %v41_v3 = vld [vmem:[%s412_s0] sm:$0xff]  ;;  %v299_v6 = vld [vmem:[%s415_s3 + $0x8] sm:$0xff]   ;;  %vm127_vm2 = vcmask 261120   ;;  %vm245_vm3 = vcmask 7168  }
  0x17   :  { %278 = vmatprep.subr.bf16.mxu1 %v331_v1  ;;  %282 = vmatprep.mubr.msk.bf16.mxu1 %vm332_vm0, %v331_v1  ;;  %v45_v4 = vpack.c.bf16 %v41_v3, %v41_v3  ;;  %v298_v5 = vld [vmem:[%s415_s3] sm:$0xff]   ;;  %v301_v16 = vld [vmem:[%s417_s5 + $0x8] sm:$0xff]  }
  0x18   :  { %273 = vmatpush3.bf16.msra.mxu0 %v297_v2  ;;  %279 = vmatpush3.bf16.msra.mxu1 %v298_v5  ;;  %v300_v7 = vld [vmem:[%s417_s5] sm:$0xff]  }
  0x19   :  { %286 = vmatprep.subr.bf16.mxu0 %v331_v1  ;;  %280 = vmatprep.subr.bf16.mxu1 %v331_v1  ;;  %v252_v8 = vld [vmem:[#allocation3] ss:$0 sm:$0xff]  ;;  %v255_v17 = vld [vmem:[%s416_s4] ss:$0 sm:$0xff] }
  0x1a   :  { %v259_v25 = vld [vmem:[#allocation2] ss:$0 sm:$0xff] }
  0x1b   :  { %275 = vmatmul.mubr.msk.bf16.vlgmr.msra.gmra.mrb[0].mxu0 %vm58_vm1, %v45_v4 }
  0x1c   :  { %290 = vmatprep.mubr.msk.bf16.mxu0 %vm332_vm0, %v331_v1  ;;  %281 = vmatpush3.bf16.msra.mxu1 %v299_v6 }
  0x1d   :  { %287 = vmatpush3.bf16.msra.mxu0 %v300_v7 }
  0x1e   :  { %288 = vmatprep.subr.bf16.mxu0 %v331_v1 }
  0x21   :  { %289 = vmatpush3.bf16.msra.mxu0 %v301_v16 }
  0xee   :  { %v96_v9 = vpop.f32.mrb[0].mxu0 }
  0xef   :  { %v97_v10 = vadd.f32 %v252_v8, %v96_v9  ;;  %v276_v11 = vpop.f32.mrb[1].mxu0 }
  0xf0   :  { %v99_v12 = vpop.f32.mrb[2].mxu0 }
  0xf1   :  { %v102_v13 = vmax.f32 %v97_v10, 0.0  ;;  %v277_v14 = vpop.f32.mrb[3].mxu0 }
  0xf3   :  { %v108_v15 = vpack.c.bf16 %v102_v13, %v102_v13 }
  0xf5   :  { %283 = vmatmul.mubr.msk.bf16.vlgmr.msra.gmra.mrb[0].mxu1 %vm127_vm2, %v108_v15 }
 0x1c8   :  { %v165_v18 = vpop.f32.mrb[0].mxu1 }
 0x1c9   :  { %v166_v19 = vadd.f32 %v255_v17, %v165_v18  ;;  %v284_v20 = vpop.f32.mrb[1].mxu1 }
 0x1ca   :  { %v168_v21 = vpop.f32.mrb[2].mxu1 }
 0x1cb   :  { %v171_v22 = vmax.f32 %v166_v19, 0.0  ;;  %v285_v23 = vpop.f32.mrb[3].mxu1 }
 0x1cd   :  { %v177_v24 = vpack.c.bf16 %v171_v22, %v171_v22 }
 0x1cf   :  { %291 = vmatmul.mubr.msk.bf16.vlgmr.msra.gmra.mrb[4].mxu0 %vm127_vm2, %v177_v24 }
 0x2a2   :  { %v233_v26 = vpop.f32.mrb[4].mxu0 }
 0x2a3   :  { %v234_v27 = vadd.f32 %v259_v25, %v233_v26  ;;  %v292_v28 = vpop.f32.mrb[5].mxu0 }
 0x2a4   :  { %v236_v29 = vpop.f32.mrb[6].mxu0 }
 0x2a5   :  { %v263_v30 = vmul.f32 -1.442695, %v234_v27  ;;  %v293_v31 = vpop.f32.mrb[7].mxu0 }
 0x2a7   :  { %302 = vpow2.f32 %v263_v30 }
 0x2b1   :  { %v303_v32 = vpop.eup %302 }
 0x2b2   :  { %v242_v33 = vadd.f32 1.0, %v303_v32 }
 0x2b4   :  { %304 = vrcp.f32 %v242_v33 }
 0x2be   :  { %v305_v34 = vpop.eup %304 }
 0x2bf   :  { %246 = vst.msk [vmem:[%s419_s7] sm:$0xff] %vm245_vm3, %v305_v34 }
 0x2c0   :  { %251 = vsyncpa [#allocation4], 1 }

</bundles_post_ra>
